<compile_context>
chip_gen: v5e
topology: v5e:2x2
jax: 0.10.0
libtpu: 0.0.40
codegen_flags: <defaults>
</compile_context>

<pallas_src>
import math

import jax
import jax.numpy as jnp
from jax.experimental import pallas as pl
from jax.experimental.pallas import tpu as pltpu


_LANES = 128                   # vreg lane width -> unmasked vst on the last dim
_TARGET_TILE_BYTES = 1 << 20   # ~1 MiB per operand tile (f32): 2048 rows x 128 lanes


# ----------------------------------------------------------------------------
# Pallas kernel: fused data-consistency update, elementwise on a (rows, 128) tile
# ----------------------------------------------------------------------------
def _dc_kernel(mask_ref, x_rec_ref, x_under_ref, o_ref):
    # Compute in f32 so a narrow (bool/int8/bf16) mask costs nothing in
    # precision; the casts ride in spare VPU slots of a memory-bound kernel.
    m = mask_ref[...].astype(jnp.float32)
    x = x_rec_ref[...].astype(jnp.float32)
    u = x_under_ref[...].astype(jnp.float32)
    o_ref[...] = ((1.0 - m) * x + u).astype(o_ref.dtype)


def dc_layer(mask, x_rec, x_under):
    """Data-consistency layer: (1 - mask) * x_rec + x_under, any shape/dtype."""
    shape = x_rec.shape
    out_dtype = jnp.result_type(x_rec.dtype, x_under.dtype)
    total = int(math.prod(shape))

    if mask.shape != shape:
        # TODO(synk): a broadcast (1,1,H,W) k-space mask could be streamed via its
        # own BlockSpec index_map instead of being materialized; kept simple here.
        mask = jnp.broadcast_to(mask, shape)

    # ---- lane-dense slab layout: (rows, 128) -------------------------------
    pad = (-total) % _LANES                 # at most 127 elements; 0 when aligned

    def to_slab(a):
        a = a.reshape(-1)
        if pad:
            a = jnp.pad(a, (0, pad))        # only hit when total % 128 != 0
        return a.reshape(-1, _LANES)

    m2, r2, u2 = to_slab(mask), to_slab(x_rec), to_slab(x_under)
    rows = r2.shape[0]

    # ---- dtype-aware sublane alignment (f32: 8, bf16: 16, int8/bool: 32) ----
    min_item = min(jnp.dtype(a.dtype).itemsize for a in (m2, r2, u2))
    min_item = min(min_item, jnp.dtype(out_dtype).itemsize)
    sublane = 8 * max(1, 4 // max(1, min_item))

    # ---- row tiling: large VMEM-bounded tiles, ragged tail left to Pallas ---
    max_rows = max(sublane, _TARGET_TILE_BYTES // (_LANES * 4))   # 2048 for f32
    if rows <= max_rows:
        block_rows = rows                   # single full-extent block (always legal)
    else:
        nblocks = -(-rows // max_rows)                       # cdiv(rows, max_rows)
        br = -(-rows // nblocks)                             # cdiv(rows, nblocks)
        block_rows = -(-br // sublane) * sublane             # round up to sublane
    grid = (pl.cdiv(rows, block_rows),)

    tile_spec = pl.BlockSpec((block_rows, _LANES), lambda i: (i, 0))

    out = pl.pallas_call(
        _dc_kernel,
        out_shape=jax.ShapeDtypeStruct((rows, _LANES), out_dtype),
        grid=grid,
        in_specs=[tile_spec, tile_spec, tile_spec],
        out_specs=tile_spec,
        compiler_params=pltpu.CompilerParams(
            dimension_semantics=("parallel",),
            vmem_limit_bytes=32 * 1024 * 1024,
        ),
    )(m2, r2, u2)

    out = out.reshape(-1)
    if pad:
        out = out[:total]                   # only taken when total % 128 != 0
    return out.reshape(shape)


# ----------------------------------------------------------------------------
# Demo / self-check
# ----------------------------------------------------------------------------
if __name__ == "__main__":
    key = jax.random.PRNGKey(0)
    fwd = jax.jit(dc_layer)

    def check(mask, x_rec, x_under):
        out = jax.block_until_ready(fwd(mask, x_rec, x_under))
        ref = (1.0 - mask.astype(x_rec.dtype)) * x_rec + x_under
        assert out.shape == x_rec.shape, out.shape
        assert bool(jnp.all(jnp.isfinite(out)))
        assert bool(jnp.allclose(out, ref, atol=1e-6, rtol=1e-6))

    # 1) The module's nominal small shape (lane-aligned, single tile).
    k1, k2, k3, key = jax.random.split(key, 4)
    shape = (2, 4, 16, 16)
    mask = (jax.random.uniform(k1, shape) < 0.5).astype(jnp.float32)
    x_rec = jax.random.normal(k2, shape, jnp.float32)
    x_under = jax.random.normal(k3, shape, jnp.float32)
    check(mask, x_rec, x_under)

    # 2) Non-128-aligned flat size (exercises the <=127-element tail-pad path).
    k1, k2, k3, key = jax.random.split(key, 4)
    shape = (3, 5, 7, 11)
    mask = (jax.random.uniform(k1, shape) < 0.5).astype(jnp.float32)
    x_rec = jax.random.normal(k2, shape, jnp.float32)
    x_under = jax.random.normal(k3, shape, jnp.float32)
    check(mask, x_rec, x_under)

    # 3) Multi-tile grid with a ragged trailing row block and a narrow int8 mask.
    k1, k2, k3, key = jax.random.split(key, 4)
    shape = (2, 5, 260, 128)   # 332800 elems -> 2600 slab rows -> 2 blocks, 2nd partial
    mask = (jax.random.uniform(k1, shape) < 0.5).astype(jnp.int8)
    x_rec = jax.random.normal(k2, shape, jnp.float32)
    x_under = jax.random.normal(k3, shape, jnp.float32)
    check(mask, x_rec, x_under)

    print("KERNEL_OK")
</pallas_src>

<mosaic_0001>
module attributes {stable_mosaic.version = 11 : i64} {
  func.func @_dc_kernel(%arg0: i32, %arg1: memref<16x128xf32, #tpu.memory_space<vmem>>, %arg2: memref<16x128xf32, #tpu.memory_space<vmem>>, %arg3: memref<16x128xf32, #tpu.memory_space<vmem>>, %arg4: memref<16x128xf32, #tpu.memory_space<vmem>>) attributes {dimension_semantics = [#tpu.dimension_semantics<parallel>], iteration_bounds = array<i64: 1>, scalar_prefetch = 0 : i64, scratch_operands = 0 : i64, tpu.core_type = #tpu.core_type<tc>, window_params = [{transform_indices = @transform_0, window_bounds = array<i64: 16, 128>}, {transform_indices = @transform_1, window_bounds = array<i64: 16, 128>}, {transform_indices = @transform_2, window_bounds = array<i64: 16, 128>}, {transform_indices = @transform_3, window_bounds = array<i64: 16, 128>}]} {
    %c0 = arith.constant 0 : index
    %c0_0 = arith.constant 0 : index
    %0 = vector.load %arg1[%c0, %c0_0] : memref<16x128xf32, #tpu.memory_space<vmem>>, vector<16x128xf32>
    %c0_1 = arith.constant 0 : index
    %c0_2 = arith.constant 0 : index
    %1 = vector.load %arg2[%c0_1, %c0_2] : memref<16x128xf32, #tpu.memory_space<vmem>>, vector<16x128xf32>
    %c0_3 = arith.constant 0 : index
    %c0_4 = arith.constant 0 : index
    %2 = vector.load %arg3[%c0_3, %c0_4] : memref<16x128xf32, #tpu.memory_space<vmem>>, vector<16x128xf32>
    %cst = arith.constant 1.000000e+00 : f32
    %3 = vector.broadcast %cst : f32 to vector<16x128xf32>
    %4 = arith.subf %3, %0 : vector<16x128xf32>
    %5 = arith.mulf %4, %1 : vector<16x128xf32>
    %6 = arith.addf %5, %2 : vector<16x128xf32>
    %c0_5 = arith.constant 0 : index
    %c0_6 = arith.constant 0 : index
    %7 = vector.load %arg4[%c0_5, %c0_6] : memref<16x128xf32, #tpu.memory_space<vmem>>, vector<16x128xf32>
    tpu.vector_store %arg4[%c0_5, %c0_6], %6 {strides = array<i32>} : memref<16x128xf32, #tpu.memory_space<vmem>>, vector<16x128xf32>,
    return
  }
  func.func @transform_0(%arg0: i32) -> (i32, i32) {
    %c0_i32 = arith.constant 0 : i32
    %c0_i32_0 = arith.constant 0 : i32
    return %arg0, %c0_i32 : i32, i32
  }
  func.func @transform_1(%arg0: i32) -> (i32, i32) {
    %c0_i32 = arith.constant 0 : i32
    %c0_i32_0 = arith.constant 0 : i32
    return %arg0, %c0_i32 : i32, i32
  }
  func.func @transform_2(%arg0: i32) -> (i32, i32) {
    %c0_i32 = arith.constant 0 : i32
    %c0_i32_0 = arith.constant 0 : i32
    return %arg0, %c0_i32 : i32, i32
  }
  func.func @transform_3(%arg0: i32) -> (i32, i32) {
    %c0_i32 = arith.constant 0 : i32
    %c0_i32_0 = arith.constant 0 : i32
    return %arg0, %c0_i32 : i32, i32
  }
}

</mosaic_0001>

<bundles_post_ra>
// kernel: dc_layer.1
= control target key start
LH: loop header
LB: loop body
LE: loop exit
PB: predicated region body
PF: predicated region fallthrough
CT: control target
= control target key end

     0   :  { %s76_s0 = inlined_call_operand.vmem [shape: f32[16,128], index: 0, kind: input, shape index: {}]   ;;  %s77_s1 = inlined_call_operand.vmem [shape: f32[16,128], index: 1, kind: input, shape index: {}]   ;;  %s78_s2 = inlined_call_operand.vmem [shape: f32[16,128], index: 2, kind: input, shape index: {}]   ;;  %s79_s3 = inlined_call_operand.vmem [shape: f32[16,128], index: 3, kind: output, shape index: {}]  }
   0x1   :  { %v14_v0 = vld [vmem:[%s76_s0] sm:$0xff]  ;;  %v15_v3 = vld [vmem:[%s76_s0 + $0x8] sm:$0xff] }
   0x2   :  { %v16_v1 = vld [vmem:[%s77_s1] sm:$0xff]  ;;  %v20_v2 = vsub.f32 1.0, %v14_v0  ;;  %v17_v4 = vld [vmem:[%s77_s1 + $0x8] sm:$0xff]  ;;  %v21_v6 = vsub.f32 1.0, %v15_v3 }
   0x3   :  { %v18_v5 = vld [vmem:[%s78_s2] sm:$0xff]  ;;  %v19_v8 = vld [vmem:[%s78_s2 + $0x8] sm:$0xff] }
   0x4   :  { %v22_v7 = vmul.f32 %v20_v2, %v16_v1  ;;  %v23_v9 = vmul.f32 %v21_v6, %v17_v4 }
   0x6   :  { %v24_v10 = vadd.f32 %v22_v7, %v18_v5  ;;  %v25_v11 = vadd.f32 %v23_v9, %v19_v8 }
   0x8   :  { %26 = vst [vmem:[%s79_s3] sm:$0xff] %v24_v10 }
   0x9   :  { %27 = vst [vmem:[%s79_s3 + $0x8] sm:$0xff] %v25_v11 }

</bundles_post_ra>
